<compile_context>
chip_gen: v7x
topology: tpu7x:2x2x1
jax: 0.10.0
libtpu: 0.0.40
codegen_flags: <defaults>
</compile_context>

<pallas_src>
import jax
import jax.numpy as jnp
from jax.experimental import pallas as pl
from jax.experimental.pallas import tpu as pltpu


# ---------------------------------------------------------------------------
# helpers
# ---------------------------------------------------------------------------
def _round_up(x, mult):
    return ((x + mult - 1) // mult) * mult


def shift_kernel_blocks(x, m, h, inverse=False):
    sh = (m // 2) * (2 ** h)
    if not inverse:
        return jnp.roll(x, shift=(-sh, -sh), axis=(-2, -1))
    return jnp.roll(x, shift=(sh, sh), axis=(-2, -1))


# ---------------------------------------------------------------------------
# Pallas kernel 1: flow network  y = x @ W^T + b   (MXU hot path)
# ---------------------------------------------------------------------------
def _flow_matmul_kernel(x_ref, wt_ref, b_ref, o_ref):
    acc = jnp.dot(x_ref[...], wt_ref[...], preferred_element_type=jnp.float32)
    o_ref[...] = acc + b_ref[...]


def flow_linear(pv, wt_p, b_p):
    """pv: (N, D) bf16, wt_p: (D, Dp) bf16 (W^T, lane-padded), b_p: (1, Dp) f32.
    Returns (N, Dp) f32."""
    N, D = pv.shape
    Dp = wt_p.shape[1]
    # Large row tile (multiple of 256) to keep the MXU busy and amortize the
    # per-grid-step pipeline overhead; single exact block when N is small.
    tile_n = N if N <= 512 else 512
    grid = (pl.cdiv(N, tile_n),)   # remainder block handled by Pallas masking

    cost = pl.CostEstimate(
        flops=2 * N * D * Dp,
        transcendentals=0,
        bytes_accessed=int(N * D * 2 + D * Dp * 2 + Dp * 4 + N * Dp * 4),
    )
    # VMEM budget: resident weight + bias + double-buffered in/out tiles.
    vmem_need = D * Dp * 2 + Dp * 4 + 2 * tile_n * D * 2 + 2 * tile_n * Dp * 4
    vmem_limit = int(min(max(2 * vmem_need + (4 << 20), 16 << 20), 64 << 20))
    # TODO(synk): K-tile the weight (grid over D with a VMEM f32 accumulator and
    #             pl.when init/finalize) when D*Dp*2 bytes approaches the VMEM
    #             budget (very large C*m*m), especially on v7x (64 MiB VMEM).

    return pl.pallas_call(
        _flow_matmul_kernel,
        out_shape=jax.ShapeDtypeStruct((N, Dp), jnp.float32),
        grid=grid,
        in_specs=[
            pl.BlockSpec((tile_n, D), lambda i: (i, 0)),
            pl.BlockSpec((D, Dp), lambda i: (0, 0)),
            pl.BlockSpec((1, Dp), lambda i: (0, 0)),
        ],
        out_specs=pl.BlockSpec((tile_n, Dp), lambda i: (i, 0)),
        compiler_params=pltpu.CompilerParams(
            dimension_semantics=("parallel",),
            vmem_limit_bytes=vmem_limit,
        ),
        cost_estimate=cost,
    )(pv, wt_p, b_p)


# ---------------------------------------------------------------------------
# Pallas kernel 2: fused Fold + coverage mask + where
#   out[bc, y, x] = y_img[bc, y//d, x//d]   if (y % d == 0 and x % d == 0)
#                 = xs[bc, y, x]            otherwise
# ---------------------------------------------------------------------------
def _make_combine_kernel(d):
    def kernel(xs_ref, y_ref, ert_ref, ec_ref, o_ref):
        xs = xs_ref[...]                                          # (ty, W)
        # dilation "scatter" via two tiny 0/1 up-sampling matmuls (MXU is idle
        # here anyway); zeros land exactly where the mask is 0.
        up = jnp.dot(y_ref[...], ec_ref[...],
                     preferred_element_type=jnp.float32)          # (ty//d, W)
        up = jnp.dot(ert_ref[...], up,
                     preferred_element_type=jnp.float32)          # (ty, W)
        ty, W = xs.shape
        row = jax.lax.broadcasted_iota(jnp.int32, (ty, W), 0)
        col = jax.lax.broadcasted_iota(jnp.int32, (ty, W), 1)
        mask = ((row & (d - 1)) == 0) & ((col & (d - 1)) == 0)    # d == 2**h
        o_ref[...] = jnp.where(mask, up.astype(o_ref.dtype), xs)
    return kernel


def _choose_row_tile(H, d):
    if H <= 512:
        return H
    step = 8 * d
    ty = (512 // step) * step
    while ty >= step and H % ty:
        ty -= step
    return ty if ty >= step and H % ty == 0 else H


def fused_fold_where(xs3, y3, d):
    """xs3: (B*C, H, W); y3: (B*C, H//d, W//d) f32.  Returns (B*C, H, W)."""
    BC, H, W = xs3.shape
    Wd = y3.shape[2]
    ty = _choose_row_tile(H, d)
    tyd = ty // d
    # 0/1 up-sampling operators (each output element picks a single y element).
    ert = (jnp.arange(ty)[:, None] == d * jnp.arange(tyd)[None, :]).astype(jnp.float32)
    ec = (d * jnp.arange(Wd)[:, None] == jnp.arange(W)[None, :]).astype(jnp.float32)

    itm = xs3.dtype.itemsize
    vmem_need = 2 * (ty * W * itm + tyd * Wd * 4 + ty * W * itm) \
        + ty * tyd * 4 + Wd * W * 4
    vmem_limit = int(min(max(2 * vmem_need + (4 << 20), 16 << 20), 64 << 20))

    return pl.pallas_call(
        _make_combine_kernel(d),
        out_shape=jax.ShapeDtypeStruct((BC, H, W), xs3.dtype),
        grid=(BC, H // ty),
        in_specs=[
            pl.BlockSpec((None, ty, W), lambda bc, k: (bc, k, 0)),
            pl.BlockSpec((None, tyd, Wd), lambda bc, k: (bc, k, 0)),
            pl.BlockSpec((ty, tyd), lambda bc, k: (0, 0)),
            pl.BlockSpec((Wd, W), lambda bc, k: (0, 0)),
        ],
        out_specs=pl.BlockSpec((None, ty, W), lambda bc, k: (bc, k, 0)),
        compiler_params=pltpu.CompilerParams(
            dimension_semantics=("parallel", "parallel"),
            vmem_limit_bytes=vmem_limit,
        ),
    )(xs3, y3, ert, ec)


# ---------------------------------------------------------------------------
# MERABlock forward
# ---------------------------------------------------------------------------
def mera_block_forward(x, wt, b, logabsdet, m, h, shift=False):
    """Equivalent of MERABlock(m, h, network, shift).forward(x).
    Returns (x_updated: (B,C,H,W), ldj: (B,))."""
    B, C, H, W = x.shape
    d = 2 ** h
    S = m * d
    # TODO(synk): partially-covered borders (H or W not divisible by m*2**h),
    #             which nn.Unfold silently drops, are not handled here.
    assert H % S == 0 and W % S == 0, "H, W must be divisible by m * 2**h"
    Py, Px = H // S, W // S
    L = Py * Px
    D = C * m * m
    Dp = _round_up(D, 128)                  # lane-dense matmul output width

    # shift handled outside the kernels (roll commutes with elementwise where).
    xs = shift_kernel_blocks(x, m, h) if shift else x

    # --- Unfold (kernel=m, dilation=d, stride=m*d) as reshape glue -----------
    # TODO(synk): express this dilated gather via the matmul BlockSpec/index_map
    #             (or a manual strided DMA) to avoid materializing the patch
    #             matrix in HBM.
    xr = xs.reshape(B, C, Py, m, d, Px, m, d)
    patches = jnp.transpose(xr[:, :, :, :, 0, :, :, 0], (0, 2, 4, 1, 3, 5))
    pv = patches.reshape(B * L, D).astype(jnp.bfloat16)

    # --- Flow-network parameters: bf16 weight, lane-padded to Dp -------------
    wt_bf16 = wt.astype(jnp.bfloat16)
    b_f32 = b.reshape(1, D).astype(jnp.float32)
    if Dp != D:
        wt_p = jnp.pad(wt_bf16, ((0, 0), (0, Dp - D)))
        b_p = jnp.pad(b_f32, ((0, 0), (0, Dp - D)))
    else:
        wt_p, b_p = wt_bf16, b_f32

    yv = flow_linear(pv, wt_p, b_p)                        # (B*L, Dp) f32
    # per-patch ldj is log|det W|; reference does ldj.view(B,-1).sum(1)
    ldj = jnp.full((B,), L * logabsdet, dtype=x.dtype)

    # --- transformed patches in decimated spatial layout (B*C, H//d, W//d) ---
    y_img = yv[:, :D].reshape(B, Py, Px, C, m, m)
    y_img = jnp.transpose(y_img, (0, 3, 1, 4, 2, 5)).reshape(B * C, H // d, W // d)

    # --- fused Fold + mask + where (single Pallas kernel) --------------------
    combined = fused_fold_where(xs.reshape(B * C, H, W), y_img, d)
    combined = combined.reshape(B, C, H, W)
    out = shift_kernel_blocks(combined, m, h, inverse=True) if shift else combined
    return out, ldj


# ---------------------------------------------------------------------------
# Pure-JAX reference mirroring the original module order (fold + cached mask +
# torch.where), using the same bf16 matmul dtype as the kernel.
# ---------------------------------------------------------------------------
def _reference(x, wt, b, logabsdet, m, h, shift=False):
    B, C, H, W = x.shape
    d = 2 ** h
    S = m * d
    Py, Px = H // S, W // S
    L = Py * Px
    D = C * m * m
    xs = shift_kernel_blocks(x, m, h) if shift else x
    xr = xs.reshape(B, C, Py, m, d, Px, m, d)
    patches = jnp.transpose(xr[:, :, :, :, 0, :, :, 0], (0, 2, 4, 1, 3, 5))
    pv = patches.reshape(B * L, D)
    yv = jnp.dot(pv.astype(jnp.bfloat16), wt.astype(jnp.bfloat16),
                 preferred_element_type=jnp.float32) + b.reshape(1, D)
    yp = jnp.transpose(yv.reshape(B, Py, Px, C, m, m), (0, 3, 1, 4, 2, 5))
    folded_r = jnp.zeros((B, C, Py, m, d, Px, m, d), x.dtype)
    folded = folded_r.at[:, :, :, :, 0, :, :, 0].set(yp.astype(x.dtype)).reshape(B, C, H, W)
    mask_r = jnp.zeros((1, 1, Py, m, d, Px, m, d), x.dtype)
    mask = jnp.broadcast_to(
        mask_r.at[:, :, :, :, 0, :, :, 0].set(1.0).reshape(1, 1, H, W), (B, C, H, W))
    if shift:
        folded = shift_kernel_blocks(folded, m, h, inverse=True)
        mask = shift_kernel_blocks(mask, m, h, inverse=True)
    return jnp.where(mask != 0, folded, x), jnp.full((B,), L * logabsdet, x.dtype)


if __name__ == "__main__":
    # Small shapes consistent with the module: B=2, C=4, H=W=16, m=2, h=1
    B, C, H, W = 2, 4, 16, 16
    m, h = 2, 1
    D = C * m * m

    key = jax.random.PRNGKey(0)
    kx, kw, kb = jax.random.split(key, 3)
    x = jax.random.normal(kx, (B, C, H, W), dtype=jnp.float32)

    # Deterministic synthetic flow-network parameters (invertible linear flow).
    Wmat = jnp.eye(D, dtype=jnp.float32) + 0.05 * jax.random.normal(kw, (D, D), jnp.float32)
    bias = 0.01 * jax.random.normal(kb, (1, D), jnp.float32)
    wt = Wmat.T
    logabsdet = jnp.linalg.slogdet(Wmat)[1].astype(jnp.float32)

    fwd = jax.jit(mera_block_forward, static_argnums=(4, 5, 6))

    for shift in (False, True):
        x_out, ldj = fwd(x, wt, bias, logabsdet, m, h, shift)
        jax.block_until_ready((x_out, ldj))

        x_ref, ldj_ref = _reference(x, wt, bias, logabsdet, m, h, shift=shift)
        assert x_out.shape == (B, C, H, W) and ldj.shape == (B,)
        # Tolerance accounts for bf16 MXU passes used inside the kernels.
        assert jnp.allclose(x_out, x_ref, atol=1e-2, rtol=5e-3), (
            f"mismatch (shift={shift}): {jnp.max(jnp.abs(x_out - x_ref))}")
        assert jnp.allclose(ldj, ldj_ref, atol=1e-5, rtol=1e-5)

    print("KERNEL_OK")
</pallas_src>

<mosaic_0001>
module attributes {stable_mosaic.version = 11 : i64} {
  func.func @_flow_matmul_kernel(%arg0: i32, %arg1: memref<32x16xbf16, #tpu.memory_space<vmem>>, %arg2: memref<16x128xbf16, #tpu.memory_space<vmem>>, %arg3: memref<1x128xf32, #tpu.memory_space<vmem>>, %arg4: memref<32x128xf32, #tpu.memory_space<vmem>>) attributes {dimension_semantics = [#tpu.dimension_semantics<parallel>], iteration_bounds = array<i64: 1>, scalar_prefetch = 0 : i64, scratch_operands = 0 : i64, tpu.core_type = #tpu.core_type<tc>, window_params = [{transform_indices = @transform_0, window_bounds = array<i64: 32, 16>}, {pipeline_mode = #tpu.pipeline_mode<synchronous>, transform_indices = @transform_1, window_bounds = array<i64: 16, 128>}, {pipeline_mode = #tpu.pipeline_mode<synchronous>, transform_indices = @transform_2, window_bounds = array<i64: 1, 128>}, {transform_indices = @transform_3, window_bounds = array<i64: 32, 128>}]} {
    %c0 = arith.constant 0 : index
    %c0_0 = arith.constant 0 : index
    %0 = vector.load %arg1[%c0, %c0_0] : memref<32x16xbf16, #tpu.memory_space<vmem>>, vector<32x16xbf16>
    %c0_1 = arith.constant 0 : index
    %c0_2 = arith.constant 0 : index
    %1 = vector.load %arg2[%c0_1, %c0_2] : memref<16x128xbf16, #tpu.memory_space<vmem>>, vector<16x128xbf16>
    %cst = arith.constant dense<0.000000e+00> : vector<32x128xf32>
    %2 = tpu.matmul %0, %1, %cst {dimension_numbers = #tpu.dot_dimension_numbers<[1], [0], [0], [1], [0, 0, 1, 1], [], []>} : vector<32x16xbf16>, vector<16x128xbf16>, vector<32x128xf32> -> vector<32x128xf32>
    %c0_3 = arith.constant 0 : index
    %c0_4 = arith.constant 0 : index
    %3 = vector.load %arg3[%c0_3, %c0_4] : memref<1x128xf32, #tpu.memory_space<vmem>>, vector<1x128xf32>
    %4 = vector.broadcast %3 : vector<1x128xf32> to vector<32x128xf32>
    %5 = arith.addf %2, %4 : vector<32x128xf32>
    %c0_5 = arith.constant 0 : index
    %c0_6 = arith.constant 0 : index
    %6 = vector.load %arg4[%c0_5, %c0_6] : memref<32x128xf32, #tpu.memory_space<vmem>>, vector<32x128xf32>
    tpu.vector_store %arg4[%c0_5, %c0_6], %5 {strides = array<i32>} : memref<32x128xf32, #tpu.memory_space<vmem>>, vector<32x128xf32>,
    return
  }
  func.func @transform_0(%arg0: i32) -> (i32, i32) {
    %c0_i32 = arith.constant 0 : i32
    %c0_i32_0 = arith.constant 0 : i32
    return %arg0, %c0_i32 : i32, i32
  }
  func.func @transform_1(%arg0: i32) -> (i32, i32) {
    %c0_i32 = arith.constant 0 : i32
    %c0_i32_0 = arith.constant 0 : i32
    %c0_i32_1 = arith.constant 0 : i32
    return %c0_i32, %c0_i32_0 : i32, i32
  }
  func.func @transform_2(%arg0: i32) -> (i32, i32) {
    %c0_i32 = arith.constant 0 : i32
    %c0_i32_0 = arith.constant 0 : i32
    %c0_i32_1 = arith.constant 0 : i32
    return %c0_i32, %c0_i32_0 : i32, i32
  }
  func.func @transform_3(%arg0: i32) -> (i32, i32) {
    %c0_i32 = arith.constant 0 : i32
    %c0_i32_0 = arith.constant 0 : i32
    return %arg0, %c0_i32 : i32, i32
  }
}

module attributes {stable_mosaic.version = 11 : i64} {
  func.func @kernel(%arg0: i32, %arg1: i32, %arg2: memref<1x16x16xf32, #tpu.memory_space<vmem>>, %arg3: memref<1x8x8xf32, #tpu.memory_space<vmem>>, %arg4: memref<16x8xf32, #tpu.memory_space<vmem>>, %arg5: memref<8x16xf32, #tpu.memory_space<vmem>>, %arg6: memref<1x16x16xf32, #tpu.memory_space<vmem>>) attributes {dimension_semantics = [#tpu.dimension_semantics<parallel>, #tpu.dimension_semantics<parallel>], iteration_bounds = array<i64: 8, 1>, scalar_prefetch = 0 : i64, scratch_operands = 0 : i64, tpu.core_type = #tpu.core_type<tc>, window_params = [{transform_indices = @transform_0, window_bounds = array<i64: 1, 16, 16>}, {transform_indices = @transform_1, window_bounds = array<i64: 1, 8, 8>}, {pipeline_mode = #tpu.pipeline_mode<synchronous>, transform_indices = @transform_2, window_bounds = array<i64: 16, 8>}, {pipeline_mode = #tpu.pipeline_mode<synchronous>, transform_indices = @transform_3, window_bounds = array<i64: 8, 16>}, {transform_indices = @transform_4, window_bounds = array<i64: 1, 16, 16>}]} {
    %c0 = arith.constant 0 : index
    %c0_0 = arith.constant 0 : index
    %c0_1 = arith.constant 0 : index
    %0 = vector.load %arg2[%c0, %c0_0, %c0_1] : memref<1x16x16xf32, #tpu.memory_space<vmem>>, vector<1x16x16xf32>
    %1 = vector.shape_cast %0 : vector<1x16x16xf32> to vector<16x16xf32>
    %c0_2 = arith.constant 0 : index
    %c0_3 = arith.constant 0 : index
    %c0_4 = arith.constant 0 : index
    %2 = vector.load %arg3[%c0_2, %c0_3, %c0_4] : memref<1x8x8xf32, #tpu.memory_space<vmem>>, vector<1x8x8xf32>
    %3 = vector.shape_cast %2 : vector<1x8x8xf32> to vector<8x8xf32>
    %c0_5 = arith.constant 0 : index
    %c0_6 = arith.constant 0 : index
    %4 = vector.load %arg5[%c0_5, %c0_6] : memref<8x16xf32, #tpu.memory_space<vmem>>, vector<8x16xf32>
    %cst = arith.constant dense<0.000000e+00> : vector<8x16xf32>
    %5 = tpu.matmul %3, %4, %cst {dimension_numbers = #tpu.dot_dimension_numbers<[1], [0], [0], [1], [0, 0, 1, 1], [], []>} : vector<8x8xf32>, vector<8x16xf32>, vector<8x16xf32> -> vector<8x16xf32>
    %c0_7 = arith.constant 0 : index
    %c0_8 = arith.constant 0 : index
    %6 = vector.load %arg4[%c0_7, %c0_8] : memref<16x8xf32, #tpu.memory_space<vmem>>, vector<16x8xf32>
    %cst_9 = arith.constant dense<0.000000e+00> : vector<16x16xf32>
    %7 = tpu.matmul %6, %5, %cst_9 {dimension_numbers = #tpu.dot_dimension_numbers<[1], [0], [0], [1], [0, 0, 1, 1], [], []>} : vector<16x8xf32>, vector<8x16xf32>, vector<16x16xf32> -> vector<16x16xf32>
    %8 = tpu.iota {dimensions = array<i32: 0>} : vector<16x16xi32>
    %9 = tpu.iota {dimensions = array<i32: 1>} : vector<16x16xi32>
    %c1_i32 = arith.constant 1 : i32
    %10 = vector.broadcast %c1_i32 : i32 to vector<16x16xi32>
    %11 = arith.andi %8, %10 : vector<16x16xi32>
    %c0_i32 = arith.constant 0 : i32
    %12 = vector.broadcast %c0_i32 : i32 to vector<16x16xi32>
    %13 = arith.cmpi eq, %11, %12 : vector<16x16xi32>
    %c1_i32_10 = arith.constant 1 : i32
    %14 = vector.broadcast %c1_i32_10 : i32 to vector<16x16xi32>
    %15 = arith.andi %9, %14 : vector<16x16xi32>
    %c0_i32_11 = arith.constant 0 : i32
    %16 = vector.broadcast %c0_i32_11 : i32 to vector<16x16xi32>
    %17 = arith.cmpi eq, %15, %16 : vector<16x16xi32>
    %18 = arith.andi %13, %17 : vector<16x16xi1>
    %19 = arith.select %18, %7, %1 : vector<16x16xi1>, vector<16x16xf32>
    %c0_12 = arith.constant 0 : index
    %c0_13 = arith.constant 0 : index
    %c0_14 = arith.constant 0 : index
    %20 = vector.load %arg6[%c0_12, %c0_13, %c0_14] : memref<1x16x16xf32, #tpu.memory_space<vmem>>, vector<1x16x16xf32>
    %21 = vector.shape_cast %20 : vector<1x16x16xf32> to vector<16x16xf32>
    %22 = vector.shape_cast %19 : vector<16x16xf32> to vector<1x16x16xf32>
    tpu.vector_store %arg6[%c0_12, %c0_13, %c0_14], %22 {strides = array<i32>} : memref<1x16x16xf32, #tpu.memory_space<vmem>>, vector<1x16x16xf32>,
    return
  }
  func.func @transform_0(%arg0: i32, %arg1: i32) -> (i32, i32, i32) {
    %c0_i32 = arith.constant 0 : i32
    %c0_i32_0 = arith.constant 0 : i32
    return %arg0, %arg1, %c0_i32 : i32, i32, i32
  }
  func.func @transform_1(%arg0: i32, %arg1: i32) -> (i32, i32, i32) {
    %c0_i32 = arith.constant 0 : i32
    %c0_i32_0 = arith.constant 0 : i32
    return %arg0, %arg1, %c0_i32 : i32, i32, i32
  }
  func.func @transform_2(%arg0: i32, %arg1: i32) -> (i32, i32) {
    %c0_i32 = arith.constant 0 : i32
    %c0_i32_0 = arith.constant 0 : i32
    %c0_i32_1 = arith.constant 0 : i32
    return %c0_i32, %c0_i32_0 : i32, i32
  }
  func.func @transform_3(%arg0: i32, %arg1: i32) -> (i32, i32) {
    %c0_i32 = arith.constant 0 : i32
    %c0_i32_0 = arith.constant 0 : i32
    %c0_i32_1 = arith.constant 0 : i32
    return %c0_i32, %c0_i32_0 : i32, i32
  }
  func.func @transform_4(%arg0: i32, %arg1: i32) -> (i32, i32, i32) {
    %c0_i32 = arith.constant 0 : i32
    %c0_i32_0 = arith.constant 0 : i32
    return %arg0, %arg1, %c0_i32 : i32, i32, i32
  }
}

</mosaic_0001>

<bundles_post_ra>
// kernel: mera_block_forward.3
= control target key start
LH: loop header
LB: loop body
LE: loop exit
PB: predicated region body
PF: predicated region fallthrough
CT: control target
= control target key end

     0   :  { %9 = vsyncpa [#allocation3], 0  ;;  %s888_s0 = inlined_call_operand.vmem [shape: f32[8,16,16], index: 0, kind: input, shape index: {}]   ;;  %s889_s1 = inlined_call_operand.vmem [shape: f32[8,8,8], index: 1, kind: input, shape index: {}]   ;;  %s890_s2 = inlined_call_operand.vmem [shape: f32[16,8], index: 2, kind: input, shape index: {}]   ;;  %s891_s3 = inlined_call_operand.vmem [shape: f32[8,16], index: 3, kind: input, shape index: {}]   ;;  %s892_s4 = inlined_call_operand.hbm [shape: f32[8,16,16], index: 4, kind: output, shape index: {}]  }
   0x1   :  { %11 = vsyncpa [#allocation3 + $0x1], 0  ;;  %s747_s15 = smov 0   ;;  %s749_s16 = smov 0  }
   0x2   :  { %s751_s17 = smov 0   ;;  %s753_s18 = smov 0  }
   0x3   :  { %s755_s19 = smov 0   ;;  %s757_s20 = smov 0  }
   0x4 LB: > { %s544_s21 = sadd.s32 4294967295, %s715_s20   ;;  %s545_s22 = sadd.s32 4294967294, %s715_s20   ;;  %s715_s20 = sphi %s757_s20, %s17_s20   ;;  %s711_s19 = sphi %s755_s19, %s903_s19   ;;  %s707_s18 = sphi %s753_s18, %s902_s18   ;;  %s703_s17 = sphi %s751_s17, %s901_s17   ;;  %s699_s16 = sphi %s749_s16, %s900_s16   ;;  %s695_s15 = sphi %s747_s15, %s899_s15  }
   0x5   : > { %s29_s23 = sadd.s32 1, %s711_s19  ;;  %s136_s24 = sadd.s32 1, %s703_s17 }
   0x6   : > { %p31_p0 = scmp.ge.s32.totalorder %s29_s23, 8  ;;  %p146_p1 = scmp.ne.s32.totalorder %s703_s17, %s699_s16 }
   0x7   : > { %p147_p2 = scmp.eq.s32.totalorder %s544_s21, 7  ;;  %p152_p3 = scmp.ne.s32.totalorder %s699_s16, %s695_s15 }
   0x8   : > { %s905_s23 = smov (%p31_p0, %s29_s23), 0  ;;  %p153_p5 = scmp.eq.s32.totalorder %s545_s22, 7 }
   0x9   : > { %p787_p4 = por %p147_p2, %p146_p1  ;;  %s131_s26 = ssub.s32 %s711_s19, %s905_s23 }
   0xa   : > { %p548_p6 = scmp.ge.s32.totalorder %s715_s20, 1  ;;  %p134_p7 = scmp.eq.s32.totalorder %s131_s26, 0 }
   0xb   : > { %p794_p8 = por %p153_p5, %p152_p3  ;;  %p200_p9 = scmp.lt.s32.totalorder %s715_s20, 9 }
   0xc   : > { %s800_s28 = scalar_select %p134_p7, %s703_s17, %s136_s24  }
   0xd   : > { %p201_p10 = pnand %p548_p6, %p200_p9 }
   0xe   : > { %v258_v0 = vld [vmem:[%s891_s3] sm:$0xff] (!%p201_p10)  ;;  %p238_p11 = scmp.lt.s32.totalorder (!%p201_p10), %s707_s18, 7  ;;  %v717_v1 = vmov (!%p201_p10), 0.0   ;;  %vm718_vm0 = vmmov (!%p201_p10), 0   ;;  %vm259_vm1 = vcmask (!%p201_p10), 64512   ;;  %v334_v5 = vld [vmem:[%s890_s2 + $0x8] sm:$0xff] (!%p201_p10)  ;;  %v416_v7 = vlaneseq (!%p201_p10) }
   0xf   : > { %204 = sbr.rel (%p201_p10) target bundleno = 470 (0x1d6), region = 36  ;;  %568 = vmatprep.subr.mxu0 (!%p201_p10), %v717_v1  ;;  %570 = vmatprep.mubr.msk.f32.mxu0 (!%p201_p10), %vm718_vm0, %v717_v1  ;;  %v333_v3 = vld [vmem:[%s890_s2] sm:$0xff] (!%p201_p10)  ;;  %s234_s14 = sand.u32 (!%p201_p10), 1, %s699_s16   ;;  %vm431_vm6 = vcmask (!%p201_p10), 130048  }
  0x10   : > { %569 = vmatpush3.msra.mxu0 (!%p201_p10), %v258_v0  ;;  %575 = vmatprep.mubr.msk.f32.mxu1 (!%p201_p10), %vm259_vm1, %v333_v3  ;;  %v417_v8 = vshrl.u32 (!%p201_p10), %v416_v7, 7  ;;  %v420_v10 = vand.u32 (!%p201_p10), 127, %v416_v7  ;;  %s549_s21 = sshll.u32 (!%p201_p10), %s234_s14, 4  ;;  %s562_s7 = sshll.u32 (!%p201_p10), %s707_s18, 8 }
  0x11   : > { %s236_s30 = scalar_lea.vmem (!%p201_p10), [#allocation2], %s549_s21  ;;  %s719_s11 = smov (!%p201_p10), [#allocation2]  }
  0x12   : > { %v418_v9 = vadd.s32 (!%p201_p10), 8, %v417_v8  ;;  %v425_v12 = vand.u32 (!%p201_p10), 1, %v420_v10  ;;  %v421_v13 = vand.u32 (!%p201_p10), 1, %v417_v8  ;;  %s641_s12 = sshll.u32 (!%p201_p10), %s719_s11, 4  ;;  %s642_s12 = int_to_ptr.vmem [resolvable:$false] %s641_s12 }
  0x13   : > { %s643_s13 = scalar_lea.vmem (!%p201_p10), %s642_s12, 512 }
  0x14   : > { %v422_v11 = vand.u32 (!%p201_p10), 1, %v418_v9  ;;  %vm820_vm3 = vcmp.eq.s32.totalorder (!%p201_p10), %v425_v12, 0  ;;  %vm824_vm4 = vcmp.eq.s32.totalorder (!%p201_p10), %v421_v13, 0 }
  0x15   : > { %vm427_vm7 = vmand (!%p201_p10), %vm824_vm4, %vm820_vm3 }
  0x16   : > { %s239_s5 = scalar_select %p238_p11, %s707_s18, 7  ;;  %vm424_vm2 = vcmp.eq.s32.totalorder %v422_v11, 0 }
  0x17   : > { %vm428_vm5 = vmand %vm424_vm2, %vm820_vm3  ;;  %s840_s18 = scalar_lea.hbm %s892_s4, %s562_s7 }
  0x18   : > { %s552_s6 = sshll.u32 %s239_s5, 3  ;;  %s561_s22 = sshll.u32 %s239_s5, 4 }
  0x19   : > { %s253_s9 = scalar_lea.vmem %s889_s1, %s552_s6  ;;  %s245_s29 = scalar_lea.vmem %s888_s0, %s561_s22 }
  0x1a   : > { %v257_v2 = vld [vmem:[%s253_s9] sm:$0xff]  ;;  %s450_s6 = sshll.u32 %s236_s30, 4  ;;  %v256_v16 = vld [vmem:[%s245_s29 + $0x8] sm:$0xff]  ;;  %s842_s9 = scalar_lea.sflag [#allocation3], %s234_s14  ;;  %s835_s6 = int_to_ptr.vmem [resolvable:$true] %s450_s6 }
  0x1b   : > { %571 = vmatmul.mubr.msk.f32.vlgmr.msra.gmra.mrb[0].mxu0 %vm259_vm1, %v257_v2  ;;  %v255_v17 = vld [vmem:[%s245_s29] sm:$0xff]  ;;  %s637_s10 = scalar_lea.vmem %s835_s6, 256  ;;  %p644_p1 = scmp.lt.s32.totalorder %s835_s6, %s642_s12 }
  0x1c   : > { %p638_p12 = scmp.ne.s32.totalorder %s835_s6, %s637_s10  ;;  %p645_p2 = scmp.lt.s32.totalorder %s643_s13, %s637_s10 }
  0x1e   : > { %p639_p13 = pnand %p638_p12, %p787_p4  ;;  %p646_p3 = por %p645_p2, %p644_p1 }
  0x20   : > { %p640_p0 = pneg %p639_p13 }
  0x22   : > { %p647_p5 = pnand %p646_p3, %p640_p0 }
  0xee   : > { %v329_v4 = vpop.f32.mrb[0].mxu0 }
  0xef   : > { %v572_v6 = vpop.f32.mrb[1].mxu0  ;;  %573 = vmatprep.subr.mxu1 %v329_v4 }
  0xf0   : > { %574 = vmatpush3.msra.mxu1 %v329_v4 }
  0xf1   : > { %576 = vmatmul.mubr.msk.f32.vlgmr.msra.gmra.mrb[0].mxu1 %vm259_vm1, %v334_v5 }
 0x1c4   : > { %v577_v18 = vpop.f32.mrb[0].mxu1 }
 0x1c5   : > { %v430_v19 = vsel %vm428_vm5, %v577_v18, %v256_v16  ;;  %v407_v20 = vpop.f32.mrb[1].mxu1 }
 0x1c6   : > { %433 = vst.msk [vmem:[%s236_s30 + $0x8] sm:$0xff] %vm431_vm6, %v430_v19  ;;  %v429_v21 = vsel %vm427_vm7, %v407_v20, %v255_v17 }
 0x1c7   : > { %432 = vst.msk [vmem:[%s236_s30] sm:$0xff] %vm431_vm6, %v429_v21 }
 0x1c8   : > { %650 = shalt.err (!%p647_p5)
}
 0x1c9   : > { %s651_s14 = scalar_lea.hbm %s840_s18, 256  ;;  %s655_s24 = scalar_lea.hbm %s892_s4, 2048 }
 0x1ca   : > { %p652_p6 = scmp.ne.s32.totalorder %s840_s18, %s651_s14  ;;  %p656_p10 = scmp.lt.u32.totalorder %s840_s18, %s892_s4 }
 0x1cb   : > { %p657_p11 = scmp.lt.u32.totalorder %s655_s24, %s651_s14  ;;  %p659_p13 = scmp.lt.u32.totalorder %s651_s14, %s840_s18 }
 0x1cc   : > { %p653_p7 = pnand %p652_p6, %p787_p4 }
 0x1cd   : > { %p658_p12 = por %p657_p11, %p656_p10 }
 0x1ce   : > { %p654_p9 = pneg %p653_p7 }
 0x1cf   : > { %p660_p0 = por %p659_p13, %p658_p12 }
 0x1d1   : > { %p661_p1 = pnand %p660_p0, %p654_p9 }
 0x1d3   : > { %664 = shalt.err (!%p661_p1)
}
 0x1d4   : > { %s720_s30 = smov 128   ;;  %s721_s7 = smov 8  }
 0x1d5   : > { %578 = dma.vmem_to_hbm [thread:$0]  (%p787_p4), %s835_s6, 256, %s840_s18, %s842_s9, %s720_s30, %s720_s30, %s721_s7  }
 0x1d6 PF: > { %p584_p2 = scmp.ge.s32.totalorder %s715_s20, 2  ;;  %s465_s5 = sand.u32 1, %s695_s15  }
 0x1d7   : > { %s466_s8 = scalar_lea.sflag [#allocation3], %s465_s5 }
 0x1d8   : > { %p581_p3 = pnand %p584_p2, %p794_p8 }
 0x1da   : > { %690 = dma.done.wait (!%p581_p3), %s466_s8, 256  }
 0x1db   : > { %692 = vsyncadd (!%p581_p3), %s466_s8, 4294967040  ;;  %s17_s20 = sadd.s32 1, %s715_s20   ;;  %s899_s15 = smov %s699_s16 }
 0x1dc   : > { %p14_p5 = scmp.ge.s32.totalorder %s17_s20, 10   ;;  %s900_s16 = smov %s703_s17 }
 0x1dd   : > { %s901_s17 = smov %s800_s28  ;;  %s902_s18 = smov %s711_s19 }
 0x1de   : > { %s903_s19 = smov %s905_s23  ;;  %16 = sbr.rel (!%p14_p5) target bundleno = 4 (0x4), region = 74 }
 0x1e5   :  { %471 = vsyncpa [#allocation3], 1 }
 0x1e6   :  { %473 = vsyncpa [#allocation3 + $0x1], 1 }

// kernel: mera_block_forward.2
= control target key start
LH: loop header
LB: loop body
LE: loop exit
PB: predicated region body
PF: predicated region fallthrough
CT: control target
= control target key end

     0   :  { %vm44_vm0 = vcmask 130048   ;;  %s170_s1 = inlined_call_operand.vmem [shape: bf16[16,128], index: 1, kind: input, shape index: {}]   ;;  %s171_s0 = inlined_call_operand.vmem [shape: bf16[32,16], index: 0, kind: input, shape index: {}]   ;;  %s172_s2 = inlined_call_operand.vmem [shape: f32[1,128], index: 2, kind: input, shape index: {}]   ;;  %s173_s3 = inlined_call_operand.vmem [shape: f32[32,128], index: 3, kind: output, shape index: {}]  }
   0x1   :  { %v123_v0 = vld [vmem:[%s170_s1] sm:$0xff]   ;;  %v125_v2 = vld [vmem:[%s171_s0 + $0x8] sm:$0xff]  }
   0x2   :  { %v124_v1 = vld [vmem:[%s171_s0] sm:$0xff]   ;;  %117 = vmatprep.subr.bf16.mxu0 %v123_v0 }
   0x3   :  { %118 = vmatpush3.bf16.msra.mxu0 %v123_v0  ;;  %119 = vmatprep.mubr.msk.bf16.mxu0 %vm44_vm0, %v124_v1  ;;  %v108_v3 = vld [vmem:[%s172_s2] ss:$0 sm:$0xff] }
   0x6   :  { %120 = vmatmul.mubr.msk.bf16.vlgmr.msra.gmra.mrb[0].mxu0 %vm44_vm0, %v125_v2 }
  0xd9   :  { %v121_v4 = vpop.f32.mrb[0].mxu0 }
  0xda   :  { %v94_v5 = vadd.f32 %v121_v4, %v108_v3  ;;  %v85_v6 = vpop.f32.mrb[1].mxu0 }
  0xdb   :  { %v86_v7 = vadd.f32 %v108_v3, %v85_v6  ;;  %v122_v8 = vpop.f32.mrb[2].mxu0 }
  0xdc   :  { %102 = vst [vmem:[%s173_s3 + $0x10] sm:$0xff] %v94_v5  ;;  %v97_v9 = vadd.f32 %v122_v8, %v108_v3  ;;  %v88_v10 = vpop.f32.mrb[3].mxu0 }
  0xdd   :  { %100 = vst [vmem:[%s173_s3] sm:$0xff] %v86_v7  ;;  %v89_v11 = vadd.f32 %v108_v3, %v88_v10 }
  0xde   :  { %103 = vst [vmem:[%s173_s3 + $0x18] sm:$0xff] %v97_v9 }
  0xdf   :  { %101 = vst [vmem:[%s173_s3 + $0x8] sm:$0xff] %v89_v11 }

</bundles_post_ra>
